<compile_context>
chip_gen: v5e
topology: v5e:2x2
jax: 0.10.0
libtpu: 0.0.40
codegen_flags: <defaults>
</compile_context>

<pallas_src>
import functools

import jax
import jax.numpy as jnp
import numpy as np
from jax.experimental import pallas as pl
from jax.experimental.pallas import tpu as pltpu

EPS = 1e-6


def _spikemax_kernel(lab_ref, x_ref, loss_ref, tot_ref, sel_ref, *, n, tb, t, tkt):
    # lab_ref : VMEM (TB, 1)   int32   labels for this batch tile
    # x_ref   : VMEM (TB, TKT) native  flat (class*time) slab tile
    # loss_ref: VMEM (TB, 1)   f32     per-row loss (padded rows -> 0)
    # tot_ref : VMEM (TB, 1)   f32     running sum over all K*T elements
    # sel_ref : VMEM (TB, 1)   f32     running sum over the label's T elements
    i = pl.program_id(0)
    j = pl.program_id(1)

    @pl.when(j == 0)
    def _():
        tot_ref[...] = jnp.zeros_like(tot_ref)
        sel_ref[...] = jnp.zeros_like(sel_ref)

    x = x_ref[...].astype(jnp.float32)                          # (TB, TKT)
    lab = lab_ref[...]                                          # (TB, 1) int32

    # Flat (class*time) index of every lane within the full K*T row.
    idx = j * tkt + jax.lax.broadcasted_iota(jnp.int32, x.shape, 1)
    lo = lab * t                                                # (TB, 1)
    sel = jnp.where((idx >= lo) & (idx < lo + t), x, 0.0)

    tot_ref[...] += jnp.sum(x, axis=1, keepdims=True)
    sel_ref[...] += jnp.sum(sel, axis=1, keepdims=True)

    @pl.when(j == pl.num_programs(1) - 1)
    def _():
        inv_t = jnp.float32(1.0 / t)
        # -log p = log(sum_k rate + eps) - log(rate[label]);  rate = sum_t / T.
        # rate[label] == 0 -> +inf, matching torch.log(0) -> -inf then NLL.
        loss = jnp.log(tot_ref[...] * inv_t + EPS) - jnp.log(sel_ref[...] * inv_t)
        # Zero padded rows of the last (partial) batch tile.
        row = i * tb + jax.lax.broadcasted_iota(jnp.int32, (tb, 1), 0)
        loss_ref[...] = jnp.where(row < n, loss, 0.0)


def _choose_tiles(n, kt, itemsize, target_bytes):
    """Pick (tb, tkt): batch-tile rows and K*T-tile lanes."""
    row_bytes = max(kt * itemsize, 1)
    if row_bytes <= target_bytes:
        tb = max(1, target_bytes // row_bytes)
        if tb >= n:
            tb = n                                   # single full-batch tile
        else:
            tb = max(8, (tb // 8) * 8)               # sublane-aligned batch tile
        return tb, kt
    # A single full-width row exceeds the target block: split the K*T axis into
    # the largest 128-multiple that divides K*T and fits the budget.
    tb = n if n < 8 else 8
    lane_budget = max(128, (target_bytes // (tb * itemsize)) // 128 * 128)
    tkt = None
    g = lane_budget
    while g >= 128:
        if kt % g == 0:
            tkt = g
            break
        g -= 128
    if tkt is None:
        # TODO(synk): K*T not a multiple of 128 -> cannot split cleanly; fall
        # back to a single full-row tile and rely on a raised VMEM limit.
        tkt = kt
    return tb, tkt


def spike_max_loss(x, label, reduction="sum", *, target_block_bytes=8 << 20):
    """SpikeMax forward (moving_window=None, mode='probability').

    x:     (N, C, *spatial, T) float array (any float dtype; kept native in HBM)
    label: (N,) integer class index into the collapsed K = C*prod(spatial) axis
    """
    n = x.shape[0]
    t = x.shape[-1]
    xr = jnp.reshape(x, (n, -1))                                 # (N, K*T), free reshape
    kt = xr.shape[1]
    lab = jnp.reshape(label.astype(jnp.int32), (n, 1))

    tb, tkt = _choose_tiles(n, kt, xr.dtype.itemsize, target_block_bytes)
    grid = (pl.cdiv(n, tb), pl.cdiv(kt, tkt))

    block_bytes = tb * tkt * xr.dtype.itemsize
    vmem_limit = int(min(max(32 << 20, 4 * block_bytes + (4 << 20)), 64 << 20))

    kernel = functools.partial(_spikemax_kernel, n=n, tb=tb, t=t, tkt=tkt)

    per_row = pl.pallas_call(
        kernel,
        out_shape=jax.ShapeDtypeStruct((n, 1), jnp.float32),
        grid=grid,
        in_specs=[
            pl.BlockSpec((tb, 1), lambda i, j: (i, 0)),          # labels
            pl.BlockSpec((tb, tkt), lambda i, j: (i, j)),        # flat spike slab
        ],
        out_specs=pl.BlockSpec((tb, 1), lambda i, j: (i, 0)),
        scratch_shapes=[
            pltpu.VMEM((tb, 1), jnp.float32),                    # total-sum accumulator
            pltpu.VMEM((tb, 1), jnp.float32),                    # label-sum accumulator
        ],
        compiler_params=pltpu.CompilerParams(
            dimension_semantics=("parallel", "arbitrary"),       # batch parallel, K*T reduce
            vmem_limit_bytes=vmem_limit,
        ),
    )(lab, xr)

    loss = jnp.sum(per_row)                                      # batch reduction in JAX
    if reduction == "mean":
        loss = loss / n
    return loss


def _spike_max_ref(x, label, reduction="sum"):
    # Pure-JAX reference mirroring the PyTorch semantics.
    n = x.shape[0]
    t = x.shape[-1]
    xr = jnp.reshape(x, (n, -1, t)).astype(jnp.float32)
    rate = jnp.mean(xr, axis=-1)                                 # (N, K)
    p = rate / (jnp.sum(rate, axis=1, keepdims=True) + EPS)      # (N, K)
    log_p = jnp.log(p)
    picked = jnp.take_along_axis(log_p, label[:, None].astype(jnp.int32), axis=1)
    loss = -jnp.sum(picked)
    if reduction == "mean":
        loss = loss / n
    return loss


if __name__ == "__main__":
    key = jax.random.PRNGKey(0)
    k1, k2 = jax.random.split(key)

    # batch=2, channels=4, spatial=16, time=8  ->  collapsed classes K = 64
    N, C, S, T = 2, 4, 16, 8
    # spike-train-like non-negative input (rates strictly > 0 for valid log)
    x = jax.random.uniform(k1, (N, C, S, T), dtype=jnp.float32)
    K = C * S
    label = jax.random.randint(k2, (N,), 0, K, dtype=jnp.int32)

    # TODO(synk): moving_window / MovingWindow path and 'softmax' mode are not
    # implemented; only the default probability + sum/mean reduction path is.
    out = jax.block_until_ready(spike_max_loss(x, label, reduction="sum"))
    ref = jax.block_until_ready(_spike_max_ref(x, label, reduction="sum"))

    assert np.allclose(np.asarray(out), np.asarray(ref), rtol=1e-5, atol=1e-5), (
        out, ref)

    print("KERNEL_OK")
</pallas_src>

<mosaic_0001>
module attributes {stable_mosaic.version = 11 : i64} {
  func.func @_spikemax_kernel(%arg0: i32, %arg1: i32, %arg2: memref<2x1xi32, #tpu.memory_space<vmem>>, %arg3: memref<2x512xf32, #tpu.memory_space<vmem>>, %arg4: memref<2x1xf32, #tpu.memory_space<vmem>>, %arg5: memref<2x1xf32, #tpu.memory_space<vmem>>, %arg6: memref<2x1xf32, #tpu.memory_space<vmem>>) attributes {dimension_semantics = [#tpu.dimension_semantics<parallel>, #tpu.dimension_semantics<arbitrary>], iteration_bounds = array<i64: 1, 1>, scalar_prefetch = 0 : i64, scratch_operands = 2 : i64, tpu.core_type = #tpu.core_type<tc>, window_params = [{transform_indices = @transform_0, window_bounds = array<i64: 2, 1>}, {transform_indices = @transform_1, window_bounds = array<i64: 2, 512>}, {transform_indices = @transform_2, window_bounds = array<i64: 2, 1>}]} {
    %c0_i32 = arith.constant 0 : i32
    %0 = arith.cmpi eq, %arg1, %c0_i32 : i32
    %1 = arith.extui %0 : i1 to i32
    %c0_i32_0 = arith.constant 0 : i32
    %2 = arith.cmpi ne, %1, %c0_i32_0 : i32
    scf.if %2 {
      %cst_17 = arith.constant 0.000000e+00 : f32
      %33 = vector.broadcast %cst_17 : f32 to vector<2x1xf32>
      %c0_18 = arith.constant 0 : index
      %c0_19 = arith.constant 0 : index
      %34 = vector.load %arg5[%c0_18, %c0_19] : memref<2x1xf32, #tpu.memory_space<vmem>>, vector<2x1xf32>
      tpu.vector_store %arg5[%c0_18, %c0_19], %33 {strides = array<i32>} : memref<2x1xf32, #tpu.memory_space<vmem>>, vector<2x1xf32>,
      %cst_20 = arith.constant 0.000000e+00 : f32
      %35 = vector.broadcast %cst_20 : f32 to vector<2x1xf32>
      %c0_21 = arith.constant 0 : index
      %c0_22 = arith.constant 0 : index
      %36 = vector.load %arg6[%c0_21, %c0_22] : memref<2x1xf32, #tpu.memory_space<vmem>>, vector<2x1xf32>
      tpu.vector_store %arg6[%c0_21, %c0_22], %35 {strides = array<i32>} : memref<2x1xf32, #tpu.memory_space<vmem>>, vector<2x1xf32>,
    } else {
    }
    %c0 = arith.constant 0 : index
    %c0_1 = arith.constant 0 : index
    %3 = vector.load %arg3[%c0, %c0_1] : memref<2x512xf32, #tpu.memory_space<vmem>>, vector<2x512xf32>
    %c0_2 = arith.constant 0 : index
    %c0_3 = arith.constant 0 : index
    %4 = vector.load %arg2[%c0_2, %c0_3] : memref<2x1xi32, #tpu.memory_space<vmem>>, vector<2x1xi32>
    %c512_i32 = arith.constant 512 : i32
    %5 = arith.muli %arg1, %c512_i32 : i32
    %6 = tpu.iota {dimensions = array<i32: 1>} : vector<2x512xi32>
    %7 = vector.broadcast %5 : i32 to vector<2x512xi32>
    %8 = arith.addi %7, %6 : vector<2x512xi32>
    %c8_i32 = arith.constant 8 : i32
    %9 = vector.broadcast %c8_i32 : i32 to vector<2x1xi32>
    %10 = arith.muli %4, %9 : vector<2x1xi32>
    %11 = vector.broadcast %10 : vector<2x1xi32> to vector<2x512xi32>
    %12 = arith.cmpi sge, %8, %11 : vector<2x512xi32>
    %c8_i32_4 = arith.constant 8 : i32
    %13 = vector.broadcast %c8_i32_4 : i32 to vector<2x1xi32>
    %14 = arith.addi %10, %13 : vector<2x1xi32>
    %15 = vector.broadcast %14 : vector<2x1xi32> to vector<2x512xi32>
    %16 = arith.cmpi slt, %8, %15 : vector<2x512xi32>
    %17 = arith.andi %12, %16 : vector<2x512xi1>
    %cst = arith.constant 0.000000e+00 : f32
    %18 = vector.broadcast %cst : f32 to vector<2x512xf32>
    %19 = arith.select %17, %3, %18 : vector<2x512xi1>, vector<2x512xf32>
    %c0_5 = arith.constant 0 : index
    %c0_6 = arith.constant 0 : index
    %20 = vector.load %arg5[%c0_5, %c0_6] : memref<2x1xf32, #tpu.memory_space<vmem>>, vector<2x1xf32>
    %cst_7 = arith.constant dense<0.000000e+00> : vector<2xf32>
    %21 = vector.multi_reduction <add>, %3, %cst_7 [1] : vector<2x512xf32> to vector<2xf32>
    %22 = vector.shape_cast %21 : vector<2xf32> to vector<2x1xf32>
    %23 = arith.addf %20, %22 : vector<2x1xf32>
    %c0_8 = arith.constant 0 : index
    %c0_9 = arith.constant 0 : index
    %24 = vector.load %arg5[%c0_8, %c0_9] : memref<2x1xf32, #tpu.memory_space<vmem>>, vector<2x1xf32>
    tpu.vector_store %arg5[%c0_8, %c0_9], %23 {strides = array<i32>} : memref<2x1xf32, #tpu.memory_space<vmem>>, vector<2x1xf32>,
    %c0_10 = arith.constant 0 : index
    %c0_11 = arith.constant 0 : index
    %25 = vector.load %arg6[%c0_10, %c0_11] : memref<2x1xf32, #tpu.memory_space<vmem>>, vector<2x1xf32>
    %cst_12 = arith.constant dense<0.000000e+00> : vector<2xf32>
    %26 = vector.multi_reduction <add>, %19, %cst_12 [1] : vector<2x512xf32> to vector<2xf32>
    %27 = vector.shape_cast %26 : vector<2xf32> to vector<2x1xf32>
    %28 = arith.addf %25, %27 : vector<2x1xf32>
    %c0_13 = arith.constant 0 : index
    %c0_14 = arith.constant 0 : index
    %29 = vector.load %arg6[%c0_13, %c0_14] : memref<2x1xf32, #tpu.memory_space<vmem>>, vector<2x1xf32>
    tpu.vector_store %arg6[%c0_13, %c0_14], %28 {strides = array<i32>} : memref<2x1xf32, #tpu.memory_space<vmem>>, vector<2x1xf32>,
    %c0_i32_15 = arith.constant 0 : i32
    %30 = arith.cmpi eq, %arg1, %c0_i32_15 : i32
    %31 = arith.extui %30 : i1 to i32
    %c0_i32_16 = arith.constant 0 : i32
    %32 = arith.cmpi ne, %31, %c0_i32_16 : i32
    scf.if %32 {
      %c0_17 = arith.constant 0 : index
      %c0_18 = arith.constant 0 : index
      %33 = vector.load %arg5[%c0_17, %c0_18] : memref<2x1xf32, #tpu.memory_space<vmem>>, vector<2x1xf32>
      %cst_19 = arith.constant 1.250000e-01 : f32
      %34 = vector.broadcast %cst_19 : f32 to vector<2x1xf32>
      %35 = arith.mulf %33, %34 : vector<2x1xf32>
      %cst_20 = arith.constant 9.99999997E-7 : f32
      %36 = vector.broadcast %cst_20 : f32 to vector<2x1xf32>
      %37 = arith.addf %35, %36 : vector<2x1xf32>
      %38 = math.log %37 : vector<2x1xf32>
      %c0_21 = arith.constant 0 : index
      %c0_22 = arith.constant 0 : index
      %39 = vector.load %arg6[%c0_21, %c0_22] : memref<2x1xf32, #tpu.memory_space<vmem>>, vector<2x1xf32>
      %cst_23 = arith.constant 1.250000e-01 : f32
      %40 = vector.broadcast %cst_23 : f32 to vector<2x1xf32>
      %41 = arith.mulf %39, %40 : vector<2x1xf32>
      %42 = math.log %41 : vector<2x1xf32>
      %43 = arith.subf %38, %42 : vector<2x1xf32>
      %c2_i32 = arith.constant 2 : i32
      %44 = arith.muli %arg0, %c2_i32 : i32
      %45 = tpu.iota {dimensions = array<i32: 0>} : vector<2x1xi32>
      %46 = vector.broadcast %44 : i32 to vector<2x1xi32>
      %47 = arith.addi %46, %45 : vector<2x1xi32>
      %c2_i32_24 = arith.constant 2 : i32
      %48 = vector.broadcast %c2_i32_24 : i32 to vector<2x1xi32>
      %49 = arith.cmpi slt, %47, %48 : vector<2x1xi32>
      %cst_25 = arith.constant 0.000000e+00 : f32
      %50 = vector.broadcast %cst_25 : f32 to vector<2x1xf32>
      %51 = arith.select %49, %43, %50 : vector<2x1xi1>, vector<2x1xf32>
      %c0_26 = arith.constant 0 : index
      %c0_27 = arith.constant 0 : index
      %52 = vector.load %arg4[%c0_26, %c0_27] : memref<2x1xf32, #tpu.memory_space<vmem>>, vector<2x1xf32>
      tpu.vector_store %arg4[%c0_26, %c0_27], %51 {strides = array<i32>} : memref<2x1xf32, #tpu.memory_space<vmem>>, vector<2x1xf32>,
    } else {
    }
    return
  }
  func.func @transform_0(%arg0: i32, %arg1: i32) -> (i32, i32) {
    %c0_i32 = arith.constant 0 : i32
    %c0_i32_0 = arith.constant 0 : i32
    return %arg0, %c0_i32 : i32, i32
  }
  func.func @transform_1(%arg0: i32, %arg1: i32) -> (i32, i32) {
    %c0_i32 = arith.constant 0 : i32
    return %arg0, %arg1 : i32, i32
  }
  func.func @transform_2(%arg0: i32, %arg1: i32) -> (i32, i32) {
    %c0_i32 = arith.constant 0 : i32
    %c0_i32_0 = arith.constant 0 : i32
    return %arg0, %c0_i32 : i32, i32
  }
}

</mosaic_0001>

<bundles_post_ra>
// kernel: tpu_custom_call.1
= control target key start
LH: loop header
LB: loop body
LE: loop exit
PB: predicated region body
PF: predicated region fallthrough
CT: control target
= control target key end

     0   :  { %7 = vsyncpa [#allocation5], 0  ;;  %s174_s12 = smov [#allocation4]   ;;  %s214_s0 = inlined_call_operand.vmem [shape: s32[2,1], index: 0, kind: input, shape index: {}]   ;;  %s215_s1 = inlined_call_operand.hbm [shape: f32[2,512], index: 1, kind: input, shape index: {}]   ;;  %s216_s2 = inlined_call_operand.vmem [shape: f32[2,1], index: 2, kind: output, shape index: {}]  }
   0x1   :  { %s15_s11 = sshll.u32 %s215_s1, 4  ;;  %s17_s13 = sshll.u32 %s174_s12, 4  ;;  %s16_s11 = int_to_ptr.hbm [resolvable:$true] %s15_s11  ;;  %s18_s13 = int_to_ptr.vmem [resolvable:$true] %s17_s13 }
   0x2   :  { %20 = dma.hbm_to_vmem [thread:$0]  %s16_s11, 128, %s18_s13, [#allocation5]  }
   0x3   :  { %172 = dma.done.wait [#allocation5], 128  }
   0x4   :  { %173 = vsyncadd [#allocation5], 4294967168  ;;  %v175_v0 = vmov 0   ;;  %v33_v1 = vld [vmem:[%s214_s0] sm:$0x3]  ;;  %v32_v4 = vld [vmem:[#allocation4] sm:$0xff]  ;;  %v35_v21 = vlaneseq }
   0x5   :  { %143 = vset.pattern.permute.xlu0 %v175_v0  ;;  %v45_v2 = vmul.u32 8, %v33_v1  ;;  %66 = vst [vmem:[#allocation1] ss:$4 sm:$0xff] %v32_v4  ;;  %vm89_vm0 = vcmask 1041408   ;;  %vm29_vm1 = vcmask 1024   ;;  %v176_v20 = vmov 0.0  }
   0x6   :  { %30 = vst.msk [vmem:[#allocation2] sm:$0x3] %vm29_vm1, %v176_v20  ;;  %v36_v23 = vand.u32 127, %v35_v21  ;;  %v129_v51 = vshrl.u32 %v35_v21, 7 }
   0x7   :  { %47 = vperm.xlu0 %143, %v45_v2   ;;  %v53_v3 = vadd.s32 8, %v45_v2  ;;  %31 = vst.msk [vmem:[#allocation3] sm:$0x3] %vm29_vm1, %v176_v20 }
   0x8   :  { %v37_v24 = vadd.s32 128, %v36_v23  ;;  %v38_v25 = vadd.s32 256, %v36_v23  ;;  %v39_v26 = vadd.s32 384, %v36_v23  ;;  %vm132_vm14 = vcmp.lt.s32.totalorder %v129_v51, 2 }
   0xc   :  { %v67_v5 = vld.sshfl [vmem:[#allocation1] sm:$0xff pattern:$0x73625140]  ;;  %v68_v6 = vld.sshfl [vmem:[#allocation1 + $0x8] sm:$0xff pattern:$0x73625140] }
   0xd   :  { %v69_v7 = vld.sshfl [vmem:[#allocation1 + $0x10] sm:$0xff pattern:$0x73625140]  ;;  %v70_v8 = vld.sshfl [vmem:[#allocation1 + $0x18] sm:$0xff pattern:$0x73625140] }
   0xe   :  { %80 = vst [vmem:[#allocation1] ss:$4 sm:$0xff] %v32_v4  ;;  %v79_v39 = vld [vmem:[#allocation2] sm:$0x3]  ;;  %v102_v42 = vld [vmem:[#allocation3] sm:$0x3] }
   0xf   :  { %55 = vperm.xlu0 %143, %v53_v3  }
  0x15   :  { %v81_v9 = vld.sshfl [vmem:[#allocation1] sm:$0xff pattern:$0x73625140]  ;;  %v82_v10 = vld.sshfl [vmem:[#allocation1 + $0x8] sm:$0xff pattern:$0x73625140] }
  0x16   :  { %v83_v11 = vld.sshfl [vmem:[#allocation1 + $0x10] sm:$0xff pattern:$0x73625140]  ;;  %v90_v12 = vsel %vm89_vm0, %v81_v9, 0.0  ;;  %v91_v13 = vsel %vm89_vm0, %v82_v10, 0.0 }
  0x17   :  { %v84_v14 = vld.sshfl [vmem:[#allocation1 + $0x18] sm:$0xff pattern:$0x73625140]  ;;  %v92_v15 = vadd.f32 %v91_v13, %v90_v12  ;;  %v93_v16 = vsel %vm89_vm0, %v83_v11, 0.0 }
  0x18   :  { %v95_v17 = vsel %vm89_vm0, %v84_v14, 0.0 }
  0x19   :  { %v94_v18 = vadd.f32 %v93_v16, %v92_v15 }
  0x1b   :  { %v96_v19 = vadd.f32 %v95_v17, %v94_v18 }
  0x1d   :  { %97 = vadd.xlane.f32.xlu1 %v96_v19 }
  0x79   :  { %v48_v22 = vpop.permute.xlu0 %47 }
  0x7a   :  { %vm49_vm2 = vcmp.ge.s32.totalorder %v36_v23, %v48_v22  ;;  %vm50_vm6 = vcmp.ge.s32.totalorder %v37_v24, %v48_v22  ;;  %vm51_vm9 = vcmp.ge.s32.totalorder %v38_v25, %v48_v22  ;;  %vm52_vm12 = vcmp.ge.s32.totalorder %v39_v26, %v48_v22 }
  0x81   :  { %v56_v27 = vpop.permute.xlu0 %55 }
  0x82   :  { %vm57_vm3 = vcmp.lt.s32.totalorder %v36_v23, %v56_v27  ;;  %vm58_vm4 = vcmp.lt.s32.totalorder %v37_v24, %v56_v27  ;;  %vm59_vm5 = vcmp.lt.s32.totalorder %v38_v25, %v56_v27  ;;  %vm60_vm7 = vcmp.lt.s32.totalorder %v39_v26, %v56_v27 }
  0x83   :  { %vm61_vm8 = vmand %vm49_vm2, %vm57_vm3 }
  0x84   :  { %vm62_vm10 = vmand %vm50_vm6, %vm58_vm4  ;;  %v75_v28 = vsel %vm61_vm8, %v67_v5, 0.0 }
  0x85   :  { %vm63_vm11 = vmand %vm51_vm9, %vm59_vm5  ;;  %v76_v29 = vsel %vm62_vm10, %v68_v6, 0.0  ;;  %v103_v30 = vsel %vm89_vm0, %v75_v28, 0.0 }
  0x86   :  { %vm64_vm13 = vmand %vm52_vm12, %vm60_vm7  ;;  %v77_v31 = vsel %vm63_vm11, %v69_v7, 0.0  ;;  %v104_v32 = vsel %vm89_vm0, %v76_v29, 0.0 }
  0x87   :  { %v78_v33 = vsel %vm64_vm13, %v70_v8, 0.0  ;;  %v105_v34 = vadd.f32 %v104_v32, %v103_v30  ;;  %v106_v35 = vsel %vm89_vm0, %v77_v31, 0.0 }
  0x88   :  { %v108_v37 = vsel %vm89_vm0, %v78_v33, 0.0 }
  0x89   :  { %v107_v36 = vadd.f32 %v106_v35, %v105_v34 }
  0x8b   :  { %v109_v38 = vadd.f32 %v108_v37, %v107_v36 }
  0x8d   :  { %110 = vadd.xlane.f32.xlu1 %v109_v38 }
  0x90   :  { %v98_v40 = vpop.xlane.xlu1 %97 }
  0x91   :  { %v99_v41 = vadd.f32 %v98_v40, %v79_v39 }
  0x93   :  { %101 = vst.msk [vmem:[#allocation2] sm:$0x3] %vm29_vm1, %v99_v41 }
  0x9a   :  { %v117_v43 = vld [vmem:[#allocation2] sm:$0x3] }
  0x9b   :  { %v118_v46 = vmul.f32 0.125, %v117_v43 }
  0x9d   :  { %v119_v47 = vadd.f32 1e-06, %v118_v46 }
  0x9f   :  { %144 = vlog2.f32 %v119_v47 }
  0xa5   :  { %v145_v50 = vpop.eup %144 }
  0xa6   :  { %v121_v53 = vmul.f32 0.6931472, %v145_v50 }
 0x100   :  { %v111_v44 = vpop.xlane.xlu1 %110 }
 0x101   :  { %v112_v45 = vadd.f32 %v111_v44, %v102_v42 }
 0x103   :  { %113 = vst.msk [vmem:[#allocation3] sm:$0x3] %vm29_vm1, %v112_v45 }
 0x10a   :  { %v122_v48 = vld [vmem:[#allocation3] sm:$0x3] }
 0x10b   :  { %v123_v49 = vmul.f32 0.125, %v122_v48 }
 0x10d   :  { %146 = vlog2.f32 %v123_v49 }
 0x113   :  { %v147_v52 = vpop.eup %146 }
 0x114   :  { %v125_v54 = vmul.f32 0.6931472, %v147_v52 }
 0x116   :  { %v126_v55 = vsub.f32 %v121_v53, %v125_v54 }
 0x118   :  { %v133_v56 = vsel %vm132_vm14, %v126_v55, 0.0 }
 0x119   :  { %134 = vst.msk [vmem:[%s216_s2] sm:$0x3] %vm29_vm1, %v133_v56 }
 0x11a   :  { %139 = vsyncpa [#allocation5], 1 }

</bundles_post_ra>
